<compile_context>
chip_gen: v7x
topology: tpu7x:2x2x1
jax: 0.10.0
libtpu: 0.0.40
codegen_flags: <defaults>
</compile_context>

<pallas_src>
import jax
import jax.numpy as jnp
from jax import lax
from jax.experimental import pallas as pl
from jax.experimental.pallas import tpu as pltpu  # noqa: F401  (kept for future tiling params)


# ---------------------------------------------------------------------------
# Kernels
# ---------------------------------------------------------------------------

def _ensemble_o1_kernel(x_ref, w_ref, b_ref, o_ref):
    """Ensemble linear with output_size == 1, done on the VPU/XLU.

    x_ref: (E, B, D)  w_ref: (E, D)  b_ref: (E, 1)  o_ref: (E, B)
    """
    x = x_ref[...]                       # (E, B, D)
    w = w_ref[...]                       # (E, D)
    prod = x * w[:, None, :]             # VPU multiply, broadcast over B
    out = jnp.sum(prod, axis=-1)         # XLU lane reduction -> (E, B)
    # TODO(synk): when B reaches production scale, keep the output last dim a
    # multiple of 128 (or emit a (1, E*B) slab) for unmasked lane-dense stores.
    o_ref[...] = (out + b_ref[...]).astype(o_ref.dtype)   # bias bcast over B


def _ensemble_fused_matmul_kernel(x_ref, wcat_ref, b_ref, o_ref):
    """General-O ensemble linear as ONE MXU pass.

    x_ref:    (E, B, D)
    wcat_ref: (D, E*O)   column-concatenated weights (wcat[:, e*O:(e+1)*O] = W_e)
    b_ref:    (E, 1, O)
    o_ref:    (E, B, O)

    Flatten x to (E*B, D), do a single matmul against (D, E*O), then the e-th
    (B, O) diagonal block of the (E*B, E*O) result is the e-th ensemble output.
    The redundant cross-ensemble FLOPs are free at these sizes; we avoid E-1
    MXU fills/drains and result-FIFO pops versus unrolled per-ensemble dots.
    """
    E, B, D = x_ref.shape
    O = o_ref.shape[-1]
    x_flat = x_ref[...].reshape(E * B, D)          # leading-dim collapse, no lane movement
    full = jnp.dot(x_flat, wcat_ref[...],
                   preferred_element_type=jnp.float32)   # (E*B, E*O)
    for e in range(E):  # static, tiny: only block extraction + bias + store
        blk = full[e * B:(e + 1) * B, e * O:(e + 1) * O]   # (B, O) diagonal block
        o_ref[e] = (blk + b_ref[e]).astype(o_ref.dtype)


def _linear_contract_kernel(x_ref, w_ref, b_ref, o_ref):
    """nn.Linear, small O: x (B,D) . weight (O,D)^T + bias, no HBM transpose.

    Contract dim 1 of both operands; the in-kernel weight transpose hides in
    the XLU slot at small O.
    """
    acc = lax.dot_general(
        x_ref[...], w_ref[...],
        dimension_numbers=(((1,), (1,)), ((), ())),
        preferred_element_type=jnp.float32,
    )                                     # (B, O)
    o_ref[...] = (acc + b_ref[...]).astype(o_ref.dtype)


def _linear_pretransposed_kernel(x_ref, wt_ref, b_ref, o_ref):
    """nn.Linear, large O: weight already pre-transposed to (D, O) outside."""
    acc = jnp.dot(x_ref[...], wt_ref[...],
                  preferred_element_type=jnp.float32)      # (B, O)
    o_ref[...] = (acc + b_ref[...]).astype(o_ref.dtype)


# ---------------------------------------------------------------------------
# Wrappers (run these under the caller's jit so reshapes/transposes fuse)
# ---------------------------------------------------------------------------

def kantorovich_forward(x, weight, bias):
    """KantorovichNetwork.forward for ensemble > 1 (EnsembleLinear / baddbmm).

    x: (E, B, D), weight: (E, D, O), bias: (E, 1, O) -> (E, B, O)
    """
    E, B, D = x.shape
    O = weight.shape[-1]

    if O == 1:
        cost = pl.CostEstimate(
            flops=2 * E * B * D,
            transcendentals=0,
            bytes_accessed=4 * (E * B * D + E * D + E + E * B),
        )
        # Hot path: squeeze the trailing size-1 dim (free under jit), compute
        # on the VPU, write an (E, B) slab.
        w2 = weight.reshape(E, D)
        b2 = bias.reshape(E, 1)
        out2 = pl.pallas_call(
            _ensemble_o1_kernel,
            out_shape=jax.ShapeDtypeStruct((E, B), x.dtype),
            cost_estimate=cost,
        )(x, w2, b2)
        return out2[:, :, None]           # (E, B, 1)

    # General O: one fused MXU pass over the column-concatenated weight.
    # Built from the weight parameter outside the kernel -> amortizes / fuses
    # under the caller's jit; keeps the kernel free of in-kernel transposes.
    w_cat = jnp.transpose(weight, (1, 0, 2)).reshape(D, E * O)   # (D, E*O)
    cost = pl.CostEstimate(
        flops=2 * (E * B) * D * (E * O),           # includes redundant blocks
        transcendentals=0,
        bytes_accessed=4 * (E * B * D + D * E * O + E * O + E * B * O),
    )
    return pl.pallas_call(
        _ensemble_fused_matmul_kernel,
        out_shape=jax.ShapeDtypeStruct((E, B, O), x.dtype),
        cost_estimate=cost,
    )(x, w_cat, bias)


def kantorovich_forward_single(x, weight, bias):
    """KantorovichNetwork.forward for ensemble == 1 (plain nn.Linear).

    x: (B, D), weight: (O, D), bias: (O,) -> (B, O)
    """
    B, D = x.shape
    O = weight.shape[0]
    cost = pl.CostEstimate(
        flops=2 * B * D * O,
        transcendentals=0,
        bytes_accessed=4 * (B * D + O * D + O + B * O),
    )

    if O == 1:
        # weight is already (1, D): no transpose; reuse the VPU kernel, E = 1.
        out2 = pl.pallas_call(
            _ensemble_o1_kernel,
            out_shape=jax.ShapeDtypeStruct((1, B), x.dtype),
            cost_estimate=cost,
        )(x[None], weight.reshape(1, D), bias.reshape(1, 1))
        return out2[0, :, None]           # (B, 1)

    if O >= 128:
        # Wide outputs: pre-transpose the weight parameter once outside the
        # kernel (amortizes across calls under jit) so Mosaic never inserts
        # in-kernel vxpose passes for the rhs minor-dim contraction.
        wt = jnp.transpose(weight)        # (D, O)
        return pl.pallas_call(
            _linear_pretransposed_kernel,
            out_shape=jax.ShapeDtypeStruct((B, O), x.dtype),
            cost_estimate=cost,
        )(x, wt, bias.reshape(1, O))

    return pl.pallas_call(
        _linear_contract_kernel,
        out_shape=jax.ShapeDtypeStruct((B, O), x.dtype),
        cost_estimate=cost,
    )(x, weight, bias.reshape(1, O))


# ---------------------------------------------------------------------------
# Self-test
# ---------------------------------------------------------------------------

if __name__ == "__main__":
    key = jax.random.PRNGKey(0)
    kx, kw, kb, kx2, kw2, kb2 = jax.random.split(key, 6)

    # Keep the wrappers under jit so the small reshapes/transposes fuse with
    # the pallas_call instead of dispatching as standalone XLA ops.
    fwd = jax.jit(kantorovich_forward)
    fwd_single = jax.jit(kantorovich_forward_single)

    # Module defaults: ensemble=4, embeddings_size=64, output_size=1; batch=8.
    E, B, D, O = 4, 8, 64, 1

    # --- ensemble branch, output_size = 1 (VPU hot path) ---
    x = jax.random.normal(kx, (E, B, D), dtype=jnp.float32)
    w = jax.random.normal(kw, (E, D, O), dtype=jnp.float32) * 0.1
    b = jax.random.normal(kb, (E, 1, O), dtype=jnp.float32) * 0.1

    out = jax.block_until_ready(fwd(x, w, b))
    ref = b + jnp.einsum("ebd,edo->ebo", x, w)
    assert out.shape == (E, B, O)
    assert jnp.allclose(out, ref, atol=1e-5, rtol=1e-5)

    # --- ensemble branch, wider output (single fused MXU pass) ---
    O2 = 8
    w8 = jax.random.normal(kw2, (E, D, O2), dtype=jnp.float32) * 0.1
    b8 = jax.random.normal(kb2, (E, 1, O2), dtype=jnp.float32) * 0.1
    out8 = jax.block_until_ready(fwd(x, w8, b8))
    ref8 = b8 + jnp.einsum("ebd,edo->ebo", x, w8)
    assert jnp.allclose(out8, ref8, atol=1e-5, rtol=1e-5)

    # --- single branch (ensemble == 1 -> nn.Linear), output_size = 1 ---
    xs = jax.random.normal(kx2, (B, D), dtype=jnp.float32)
    wl = jax.random.normal(kw, (1, D), dtype=jnp.float32) * 0.1
    bl = jax.random.normal(kb, (1,), dtype=jnp.float32) * 0.1
    outs = jax.block_until_ready(fwd_single(xs, wl, bl))
    refs = xs @ wl.T + bl
    assert outs.shape == (B, 1)
    assert jnp.allclose(outs, refs, atol=1e-5, rtol=1e-5)

    # --- single branch, small wide output (in-kernel contraction path) ---
    wl8 = jax.random.normal(kw2, (O2, D), dtype=jnp.float32) * 0.1
    bl8 = jax.random.normal(kb2, (O2,), dtype=jnp.float32) * 0.1
    outs8 = jax.block_until_ready(fwd_single(xs, wl8, bl8))
    refs8 = xs @ wl8.T + bl8
    assert jnp.allclose(outs8, refs8, atol=1e-5, rtol=1e-5)

    # --- single branch, large output (pre-transposed-weight path, O >= 128) ---
    O3 = 128
    wl128 = jax.random.normal(kw2, (O3, D), dtype=jnp.float32) * 0.1
    bl128 = jax.random.normal(kb2, (O3,), dtype=jnp.float32) * 0.1
    outs128 = jax.block_until_ready(fwd_single(xs, wl128, bl128))
    refs128 = xs @ wl128.T + bl128
    assert jnp.allclose(outs128, refs128, atol=1e-5, rtol=1e-5)

    print("KERNEL_OK")
</pallas_src>

<mosaic_0001>
module attributes {stable_mosaic.version = 11 : i64} {
  func.func @_ensemble_o1_kernel(%arg0: memref<4x8x64xf32, #tpu.memory_space<vmem>>, %arg1: memref<4x64xf32, #tpu.memory_space<vmem>>, %arg2: memref<4x1xf32, #tpu.memory_space<vmem>>, %arg3: memref<4x8xf32, #tpu.memory_space<vmem>>) attributes {dimension_semantics = [], scalar_prefetch = 0 : i64, scratch_operands = 0 : i64, tpu.core_type = #tpu.core_type<tc>} {
    %c0 = arith.constant 0 : index
    %c0_0 = arith.constant 0 : index
    %c0_1 = arith.constant 0 : index
    %0 = vector.load %arg0[%c0, %c0_0, %c0_1] : memref<4x8x64xf32, #tpu.memory_space<vmem>>, vector<4x8x64xf32>
    %c0_2 = arith.constant 0 : index
    %c0_3 = arith.constant 0 : index
    %1 = vector.load %arg1[%c0_2, %c0_3] : memref<4x64xf32, #tpu.memory_space<vmem>>, vector<4x64xf32>
    %2 = vector.shape_cast %1 : vector<4x64xf32> to vector<4x1x64xf32>
    %3 = vector.broadcast %2 : vector<4x1x64xf32> to vector<4x8x64xf32>
    %4 = arith.mulf %0, %3 : vector<4x8x64xf32>
    %cst = arith.constant dense<0.000000e+00> : vector<4x8xf32>
    %5 = vector.multi_reduction <add>, %4, %cst [2] : vector<4x8x64xf32> to vector<4x8xf32>
    %c0_4 = arith.constant 0 : index
    %c0_5 = arith.constant 0 : index
    %6 = vector.load %arg2[%c0_4, %c0_5] : memref<4x1xf32, #tpu.memory_space<vmem>>, vector<4x1xf32>
    %7 = vector.broadcast %6 : vector<4x1xf32> to vector<4x8xf32>
    %8 = arith.addf %5, %7 : vector<4x8xf32>
    %c0_6 = arith.constant 0 : index
    %c0_7 = arith.constant 0 : index
    %9 = vector.load %arg3[%c0_6, %c0_7] : memref<4x8xf32, #tpu.memory_space<vmem>>, vector<4x8xf32>
    tpu.vector_store %arg3[%c0_6, %c0_7], %8 {strides = array<i32>} : memref<4x8xf32, #tpu.memory_space<vmem>>, vector<4x8xf32>,
    return
  }
}

</mosaic_0001>

<bundles_post_ra>
// kernel: kantorovich_forward.1
= control target key start
LH: loop header
LB: loop body
LE: loop exit
PB: predicated region body
PF: predicated region fallthrough
CT: control target
= control target key end

     0   :  { %8 = vsyncpa [#allocation3], 0  ;;  %s300_s0 = inlined_call_operand.hbm [shape: f32[4,8,64], index: 0, kind: input, shape index: {}]   ;;  %s301_s1 = inlined_call_operand.vmem [shape: f32[4,64], index: 1, kind: input, shape index: {}]   ;;  %s302_s2 = inlined_call_operand.vmem [shape: f32[4,1], index: 2, kind: input, shape index: {}]   ;;  %s303_s3 = inlined_call_operand.hbm [shape: f32[4,8], index: 3, kind: output, shape index: {}]  }
   0x1   :  { %9 = vsyncpa [#allocation4], 0  ;;  %s240_s12 = smov [#allocation2]   ;;  %s192_s16 = scalar_lea.hbm %s300_s0, 512 }
   0x2   :  { %s15_s13 = sshll.u32 %s240_s12, 4  ;;  %p193_p0 = scmp.ne.s32.totalorder %s300_s0, %s192_s16  ;;  %s16_s13 = int_to_ptr.vmem [resolvable:$true] %s15_s13 }
   0x3   :  { %p196_p1 = scmp.lt.u32.totalorder %s192_s16, %s300_s0 }
   0x5   :  { %p198_p2 = pnand %p196_p1, %p193_p0 }
   0x7   :  { %201 = shalt.err (!%p198_p2)
}
   0x8   :  { %s202_s21 = scalar_lea.vmem %s16_s13, 512  ;;  %p207_p4 = scmp.lt.s32.totalorder %s16_s13, %s16_s13 }
   0x9   :  { %p203_p3 = scmp.ne.s32.totalorder %s16_s13, %s202_s21  ;;  %p208_p5 = scmp.lt.s32.totalorder %s202_s21, %s202_s21 }
   0xb   :  { %p209_p6 = por %p208_p5, %p207_p4 }
   0xd   :  { %p210_p7 = pnand %p209_p6, %p203_p3 }
   0xf   :  { %213 = shalt.err (!%p210_p7)
}
  0x10   :  { %s241_s22 = smov 128   ;;  %s242_s23 = smov 8  }
  0x11   :  { %21 = dma.hbm_to_vmem [thread:$0]  %s300_s0, 512, %s16_s13, [#allocation3], %s241_s22, %s241_s22, %s242_s23  }
  0x12   :  { %236 = dma.done.wait [#allocation3], 512  }
  0x13   :  { %237 = vsyncadd [#allocation3], 4294966784  ;;  %v46_v0 = vlaneseq  ;;  %v243_v1 = vmov 1966171168   ;;  %v244_v3 = vmov 0   ;;  %v29_v11 = vld [vmem:[#allocation2] sm:$0xff] }
  0x14   :  { %v44_v2 = vunpack.c.l.s4 %v243_v1  ;;  %190 = vset.pattern.permute.xlu0 %v244_v3  ;;  %191 = vset.pattern.permute.xlu1 %v244_v3  ;;  %v183_v8 = vld.sshfl [vmem:[%s301_s1] sm:$0x33 pattern:$0x75316420]  ;;  %vm83_vm0 = vcmask 523264   ;;  %v30_v15 = vld [vmem:[#allocation2 + $0x8] sm:$0xff] }
  0x15   :  { %v47_v4 = vshrl.u32 %v46_v0, 7  ;;  %v42_v9 = vcombine.high %v183_v8, %v183_v8  ;;  %v31_v16 = vld [vmem:[#allocation2 + $0x10] sm:$0xff]  ;;  %v32_v21 = vld [vmem:[#allocation2 + $0x18] sm:$0xff]  ;;  %v96_v30 = vld [vmem:[%s302_s2] sm:$0xf]  ;;  %v142_v31 = vand.u32 127, %v46_v0 }
  0x16   :  { %v45_v5 = vunpack.c.0.s8 %v44_v2  ;;  %vm159_vm1 = vcmask 1041409   ;;  %vm161_vm2 = vcmask 1042434   ;;  %s245_s2 = smov [#allocation5]   ;;  %vm163_vm3 = vcmask 1043459  }
  0x17   :  { %v61_v7 = vsub.s32 0, %v47_v4  ;;  %v145_v32 = vsub.s32 %v142_v31, %v47_v4  ;;  %v107_v35 = vsub.s32 1, %v47_v4  ;;  %v111_v38 = vsub.s32 2, %v47_v4  ;;  %s174_s28 = sshll.u32 %s245_s2, 4  ;;  %s175_s28 = int_to_ptr.vmem [resolvable:$true] %s174_s28 }
  0x18   :  { %v48_v6 = vsub.s32 %v45_v5, %v47_v4  ;;  %v115_v43 = vsub.s32 3, %v47_v4  ;;  %vm166_vm4 = vcmask 60416   ;;  %s214_s29 = scalar_lea.vmem %s175_s28, 64  ;;  %p219_p9 = scmp.lt.s32.totalorder %s175_s28, %s175_s28 }
  0x19   :  { %p215_p8 = scmp.ne.s32.totalorder %s175_s28, %s214_s29  ;;  %p220_p10 = scmp.lt.s32.totalorder %s214_s29, %s214_s29 }
  0x1a   :  { %v49_v10 = vrot.slane %v183_v8, %v48_v6  ;;  %v56_v13 = vrot.slane %v42_v9, %v48_v6 }
  0x1b   :  { %p221_p11 = por %p220_p10, %p219_p9 }
  0x1c   :  { %v62_v12 = vrot.slane %v49_v10, %v61_v7  ;;  %v57_v14 = vcombine.high %v49_v10, %v49_v10  ;;  %v66_v18 = vrot.slane %v56_v13, %v61_v7  ;;  %v58_v20 = vcombine.high %v56_v13, %v56_v13 }
  0x1d   :  { %p222_p12 = pnand %p221_p11, %p215_p8 }
  0x1e   :  { %v79_v17 = vmul.f32 %v62_v12, %v29_v11  ;;  %v70_v19 = vrot.slane %v57_v14, %v61_v7  ;;  %v80_v23 = vmul.f32 %v66_v18, %v30_v15  ;;  %v74_v25 = vrot.slane %v58_v20, %v61_v7 }
  0x20   :  { %v84_v22 = vsel %vm83_vm0, %v79_v17, 0.0  ;;  %v81_v24 = vmul.f32 %v70_v19, %v31_v16  ;;  %v87_v26 = vsel %vm83_vm0, %v80_v23, 0.0  ;;  %v82_v28 = vmul.f32 %v74_v25, %v32_v21 }
  0x21   :  { %85 = vadd.xlane.f32.xlu0 %v84_v22 }
  0x22   :  { %v90_v27 = vsel %vm83_vm0, %v81_v24, 0.0  ;;  %v93_v29 = vsel %vm83_vm0, %v82_v28, 0.0 }
  0x23   :  { %91 = vadd.xlane.f32.xlu1 %v90_v27 }
  0x25   :  { %88 = vadd.xlane.f32.xlu0 %v87_v26 }
  0x27   :  { %94 = vadd.xlane.f32.xlu1 %v93_v29 }
  0x3b   :  { %99 = vperm.xlu0 %190, %v96_v30  }
  0xae   :  { %v86_v33 = vpop.xlane.xlu0 %85 }
  0xb0   :  { %v92_v41 = vpop.xlane.xlu1 %91 }
  0xb2   :  { %v89_v34 = vpop.xlane.xlu0 %88 }
  0xb4   :  { %v95_v47 = vpop.xlane.xlu1 %94 }
  0xba   :  { %v100_v36 = vpop.permute.xlu0 %99 }
  0xbb   :  { %v104_v37 = vrot.slane %v100_v36, %v61_v7  ;;  %v108_v39 = vrot.slane %v100_v36, %v107_v35  ;;  %v112_v42 = vrot.slane %v100_v36, %v111_v38  ;;  %v116_v45 = vrot.slane %v100_v36, %v115_v43 }
  0xbd   :  { %v121_v40 = vadd.f32 %v104_v37, %v86_v33  ;;  %v122_v44 = vadd.f32 %v108_v39, %v89_v34  ;;  %v123_v46 = vadd.f32 %v112_v42, %v92_v41  ;;  %v124_v48 = vadd.f32 %v116_v45, %v95_v47 }
  0xbf   :  { %130 = vperm.xlu1 %191, %v121_v40  }
  0xc3   :  { %133 = vperm.xlu1 %191, %v122_v44  }
  0xc7   :  { %136 = vperm.xlu1 %191, %v123_v46  }
  0xcb   :  { %139 = vperm.xlu1 %191, %v124_v48  }
 0x13e   :  { %v131_v49 = vpop.permute.xlu1 %130 }
 0x13f   :  { %v146_v54 = vrot.slane %v131_v49, %v145_v32 }
 0x142   :  { %v134_v50 = vpop.permute.xlu1 %133 }
 0x143   :  { %v150_v52 = vrot.slane %v134_v50, %v145_v32 }
 0x145   :  { %v160_v56 = vsel %vm159_vm1, %v150_v52, %v146_v54 }
 0x146   :  { %v137_v51 = vpop.permute.xlu1 %136 }
 0x147   :  { %v154_v53 = vrot.slane %v137_v51, %v145_v32 }
 0x149   :  { %v162_v58 = vsel %vm161_vm2, %v154_v53, %v160_v56 }
 0x14a   :  { %v140_v55 = vpop.permute.xlu1 %139 }
 0x14b   :  { %v158_v57 = vrot.slane %v140_v55, %v145_v32 }
 0x14d   :  { %v164_v59 = vsel %vm163_vm3, %v158_v57, %v162_v58 }
 0x14e   :  { %167 = vst.msk [vmem:[#allocation5] sm:$0xf] %vm166_vm4, %v164_v59 }
 0x14f   :  { %225 = shalt.err (!%p222_p12)
}
 0x150   :  { %s226_s5 = scalar_lea.hbm %s303_s3, 64 }
 0x151   :  { %p227_p13 = scmp.ne.s32.totalorder %s303_s3, %s226_s5  ;;  %p230_p0 = scmp.lt.u32.totalorder %s226_s5, %s303_s3 }
 0x153   :  { %p232_p1 = pnand %p230_p0, %p227_p13 }
 0x155   :  { %235 = shalt.err (!%p232_p1)
}
 0x156   :  { %177 = dma.vmem_to_hbm [thread:$0]  %s175_s28, 64, %s303_s3, [#allocation4]  }
 0x157   :  { %238 = dma.done.wait [#allocation4], 64  }
 0x158   :  { %239 = vsyncadd [#allocation4], 4294967232 }
 0x159   :  { %181 = vsyncpa [#allocation3], 1 }
 0x15a   :  { %182 = vsyncpa [#allocation4], 1 }

</bundles_post_ra>
